<compile_context>
chip_gen: v7x
topology: tpu7x:2x2x1
jax: 0.10.0
libtpu: 0.0.40
codegen_flags: <defaults>
</compile_context>

<pallas_src>
import functools

import jax
import jax.numpy as jnp
from jax import lax
from jax.experimental import pallas as pl
from jax.experimental.pallas import tpu as pltpu


# ---------------------------------------------------------------------------
# Pallas kernel: causal GQA flash attention, packed-triangular grid,
# online softmax with fp32 state.  Row layout is heads-major:
# row r of the (n_rep*bq, ...) tiles corresponds to head r//bq, query r%bq.
# ---------------------------------------------------------------------------
def _flash_attn_kernel(iq_ref, ik_ref, q_ref, k_ref, v_ref, o_ref,
                       m_scr, l_scr, acc_scr, *, n_rep, block_q, block_k):
    s_idx = pl.program_id(2)
    iq = iq_ref[s_idx]            # query-block index for this packed step
    ik = ik_ref[s_idx]            # kv-block index  (always ik <= iq)

    R = n_rep * block_q
    N = q_ref.shape[-1]

    @pl.when(ik == 0)
    def _init():
        m_scr[...] = jnp.full_like(m_scr, -jnp.inf)
        l_scr[...] = jnp.zeros_like(l_scr)
        acc_scr[...] = jnp.zeros_like(acc_scr)

    q = q_ref[0].reshape(R, N)    # (R, N) bf16; softmax scale already folded in
    k = k_ref[0, 0]               # (bk, N) bf16
    v = v_ref[0, 0]               # (bk, N) bf16

    def scores():
        return lax.dot_general(q, k, (((1,), (1,)), ((), ())),
                               preferred_element_type=jnp.float32)

    def update(s):
        m_prev = m_scr[...]
        m_new = jnp.maximum(m_prev, jnp.max(s, axis=-1, keepdims=True))
        alpha = jnp.exp(m_prev - m_new)                       # (R,1) fp32
        # bf16 exp: at head_dim 64 the EUP (not the MXU) is the binding unit.
        p = jnp.exp((s - m_new).astype(jnp.bfloat16))         # (R,bk) bf16
        l_scr[...] = alpha * l_scr[...] + jnp.sum(
            p, axis=-1, keepdims=True, dtype=jnp.float32)
        acc_scr[...] = alpha * acc_scr[...] + lax.dot_general(
            p, v, (((1,), (0,)), ((), ())),
            preferred_element_type=jnp.float32)
        m_scr[...] = m_new

    @pl.when(ik != iq)
    def _interior():              # strictly below the diagonal: no mask needed
        update(scores())

    @pl.when(ik == iq)
    def _diagonal():              # diagonal block: causal mask + finalize
        s3 = scores().reshape(n_rep, block_q, block_k)
        qpos = lax.broadcasted_iota(jnp.int32, (block_q, block_k), 0)
        kpos = lax.broadcasted_iota(jnp.int32, (block_q, block_k), 1)
        mask = (kpos <= qpos)[None]                           # (1,bq,bk)
        s = jnp.where(mask, s3, -1e30).reshape(R, block_k)
        update(s)
        # This packed step is the last kv block this q block attends to.
        inv_l = pl.reciprocal(l_scr[...], approx=True)
        o_ref[0] = (acc_scr[...] * inv_l).reshape(
            n_rep, block_q, N).astype(o_ref.dtype)


def flash_attention(q, k, v):
    """Causal GQA attention.

    q: (B, H, T, N) bf16 (softmax scale pre-folded), k/v: (B, Hkv, T, N) bf16
    -> (B, H, T, N) bf16.
    """
    B, H, T, N = q.shape
    Hkv = k.shape[1]
    assert H % Hkv == 0
    n_rep = H // Hkv

    # Block selection: biggest block up to 256 (sweep 256-512 for long T).
    MAX_BLK = 256
    if T % MAX_BLK == 0:
        blk = MAX_BLK
    elif T <= MAX_BLK:
        blk = ((T + 7) // 8) * 8          # one block, rounded to sublane mult.
    else:
        blk = MAX_BLK
    t_pad = pl.cdiv(T, blk) * blk
    if t_pad != T:
        # TODO(synk): handle the ragged final block with masking instead of a
        # zero-pad pass (only hit when T is not block-aligned).
        pad = [(0, 0), (0, 0), (0, t_pad - T), (0, 0)]
        q = jnp.pad(q, pad)
        k = jnp.pad(k, pad)
        v = jnp.pad(v, pad)

    nq = t_pad // blk
    # Packed lower-triangular step tables: only causally-needed (iq, ik) pairs.
    iq_list, ik_list = [], []
    for i in range(nq):
        for j in range(i + 1):
            iq_list.append(i)
            ik_list.append(j)
    iq_tbl = jnp.asarray(iq_list, dtype=jnp.int32)
    ik_tbl = jnp.asarray(ik_list, dtype=jnp.int32)
    n_steps = len(iq_list)

    R = n_rep * blk
    kernel = functools.partial(_flash_attn_kernel, n_rep=n_rep,
                               block_q=blk, block_k=blk)

    out = pl.pallas_call(
        kernel,
        out_shape=jax.ShapeDtypeStruct((B, H, t_pad, N), jnp.bfloat16),
        grid_spec=pltpu.PrefetchScalarGridSpec(
            num_scalar_prefetch=2,
            grid=(B, Hkv, n_steps),
            in_specs=[
                # all n_rep query heads of kv-group g in one block
                pl.BlockSpec((1, n_rep, blk, N),
                             lambda b, g, s, iq_t, ik_t: (b, g, iq_t[s], 0)),
                pl.BlockSpec((1, 1, blk, N),
                             lambda b, g, s, iq_t, ik_t: (b, g, ik_t[s], 0)),
                pl.BlockSpec((1, 1, blk, N),
                             lambda b, g, s, iq_t, ik_t: (b, g, ik_t[s], 0)),
            ],
            out_specs=pl.BlockSpec((1, n_rep, blk, N),
                                   lambda b, g, s, iq_t, ik_t: (b, g, iq_t[s], 0)),
            scratch_shapes=[
                pltpu.VMEM((R, 1), jnp.float32),   # m (running max)
                pltpu.VMEM((R, 1), jnp.float32),   # l (running denom)
                pltpu.VMEM((R, N), jnp.float32),   # acc
            ]),
        compiler_params=pltpu.CompilerParams(
            dimension_semantics=("parallel", "parallel", "arbitrary"),
            vmem_limit_bytes=32 * 1024 * 1024),    # raise v5e's 16 MiB default
    )(iq_tbl, ik_tbl, q, k, v)

    if t_pad != T:
        out = out[:, :, :T, :]
    return out


# ---------------------------------------------------------------------------
# Plain-JAX glue reproducing the module's forward semantics
# ---------------------------------------------------------------------------
def _bf16_matmul(x, w):
    """x: (..., K), w: (O, K) -> (..., O) fp32 (bf16 MXU, fp32 accumulation)."""
    return lax.dot_general(x.astype(jnp.bfloat16), w.astype(jnp.bfloat16),
                           (((x.ndim - 1,), (1,)), ((), ())),
                           preferred_element_type=jnp.float32)


def rms_norm(x, weight, eps):
    xf = x.astype(jnp.float32)
    var = jnp.mean(xf * xf, axis=-1, keepdims=True)
    xf = xf * lax.rsqrt(var + eps)
    return weight * xf.astype(x.dtype)


def rope_cache(T, rotary_dim, theta):
    half = rotary_dim // 2
    freq_seq = jnp.arange(half, dtype=jnp.float32)
    inv_freq = 1.0 / theta ** (freq_seq / half)
    positions = jnp.arange(T, dtype=jnp.float32)
    freqs = jnp.einsum('i,j->ij', positions, inv_freq)
    emb = jnp.concatenate([freqs, freqs], axis=-1)
    return jnp.cos(emb)[None], jnp.sin(emb)[None]        # (1, T, rotary_dim)


def rotate_half(x):
    half = x.shape[-1] // 2
    return jnp.concatenate([-x[..., half:], x[..., :half]], axis=-1)


def apply_rope_one(x, cos, sin):
    cos = cos[:, None]            # (1, 1, T, N)
    sin = sin[:, None]
    return x * cos + rotate_half(x) * sin


def gqa_rope_attention_forward(params, hidden_states, attention_mask=None, *,
                               head_size, n_heads, n_kv_heads, rope_theta, eps):
    B, T, _ = hidden_states.shape
    H, N = n_heads, head_size
    Hkv = n_kv_heads

    # projections (bias-free, as in the example config), bf16 MXU / fp32 acc
    q = _bf16_matmul(hidden_states, params['q_proj_w'])   # (B, T, H*N)
    k = _bf16_matmul(hidden_states, params['k_proj_w'])   # (B, T, Hkv*N)
    v = _bf16_matmul(hidden_states, params['v_proj_w'])   # (B, T, Hkv*N)

    # per-head RMSNorm (QKNormMode == True), then (B, heads, T, N)
    q = rms_norm(q.reshape(B, T, H, N), params['q_norm_w'], eps)
    k = rms_norm(k.reshape(B, T, Hkv, N), params['k_norm_w'], eps)
    q = q.transpose(0, 2, 1, 3)
    k = k.transpose(0, 2, 1, 3)
    v = v.reshape(B, T, Hkv, N).transpose(0, 2, 1, 3)

    # RoPE (cos/sin cast to bf16, as in the reference).  The softmax scale is
    # folded into Q's rotary factors (free: (1,T,N) tensors, and exact here
    # since scale is a power of two), so the kernel never multiplies scores.
    cos, sin = rope_cache(T, N, rope_theta)
    cos = cos.astype(jnp.bfloat16)
    sin = sin.astype(jnp.bfloat16)
    scale = head_size ** -0.5
    q = apply_rope_one(q, cos * scale, sin * scale)
    k = apply_rope_one(k, cos, sin)

    # TODO(synk): explicit (non-None) attention_mask path of sdpa is not
    # implemented in the Pallas kernel; this matches the module's default call
    # (attention_mask=None, T > 1 -> is_causal=True).
    attn = flash_attention(q.astype(jnp.bfloat16),
                           k.astype(jnp.bfloat16),
                           v.astype(jnp.bfloat16))        # (B, H, T, N) bf16

    attn = attn.transpose(0, 2, 1, 3).reshape(B, T, H * N)
    out = _bf16_matmul(attn, params['o_proj_w'])
    return out.astype(hidden_states.dtype)


# ---------------------------------------------------------------------------
# Deterministic synthetic parameters
# ---------------------------------------------------------------------------
def init_params(key, n_embd, head_size, n_heads, n_kv_heads):
    C = n_heads * head_size
    Ckv = n_kv_heads * head_size
    ks = jax.random.split(key, 4)

    def rnd(k, shape, scale=0.02):
        return scale * jax.random.normal(k, shape, jnp.float32)

    return dict(
        q_proj_w=rnd(ks[0], (C, n_embd)),
        k_proj_w=rnd(ks[1], (Ckv, n_embd)),
        v_proj_w=rnd(ks[2], (Ckv, n_embd)),
        o_proj_w=rnd(ks[3], (n_embd, C)),
        q_norm_w=jnp.ones((head_size,), jnp.float32),
        k_norm_w=jnp.ones((head_size,), jnp.float32),
    )


if __name__ == "__main__":
    # small config consistent with the module
    B, T = 2, 16
    n_embd = 64            # Hidden_dim
    head_size = 64         # args.head_size_a
    n_heads = 2            # num_attention_heads -> dim_att = 128
    n_kv_heads = 1         # num_key_value_heads (GQA groups = 2)
    rope_theta = 1000000.0
    rms_norm_eps = 1e-6

    key = jax.random.PRNGKey(0)
    kp, kx = jax.random.split(key)

    params = init_params(kp, n_embd, head_size, n_heads, n_kv_heads)
    x = 0.1 * jax.random.normal(kx, (B, T, n_embd), jnp.float32)

    out = gqa_rope_attention_forward(
        params, x, attention_mask=None,
        head_size=head_size, n_heads=n_heads, n_kv_heads=n_kv_heads,
        rope_theta=rope_theta, eps=rms_norm_eps)

    jax.block_until_ready(out)
    assert out.shape == (B, T, n_embd)
    assert bool(jnp.all(jnp.isfinite(out)))
    print("KERNEL_OK")
</pallas_src>

<mosaic_0001>
module attributes {stable_mosaic.version = 11 : i64} {
  func.func @_flash_attn_kernel(%arg0: i32, %arg1: i32, %arg2: i32, %arg3: memref<1xi32, #tpu.memory_space<smem>>, %arg4: memref<1xi32, #tpu.memory_space<smem>>, %arg5: memref<1x2x16x64xbf16, #tpu.memory_space<vmem>>, %arg6: memref<1x1x16x64xbf16, #tpu.memory_space<vmem>>, %arg7: memref<1x1x16x64xbf16, #tpu.memory_space<vmem>>, %arg8: memref<1x2x16x64xbf16, #tpu.memory_space<vmem>>, %arg9: memref<32x1xf32, #tpu.memory_space<vmem>>, %arg10: memref<32x1xf32, #tpu.memory_space<vmem>>, %arg11: memref<32x64xf32, #tpu.memory_space<vmem>>) attributes {dimension_semantics = [#tpu.dimension_semantics<parallel>, #tpu.dimension_semantics<parallel>, #tpu.dimension_semantics<arbitrary>], iteration_bounds = array<i64: 2, 1, 1>, scalar_prefetch = 2 : i64, scratch_operands = 3 : i64, tpu.core_type = #tpu.core_type<tc>, window_params = [{transform_indices = @transform_0, window_bounds = array<i64: 1, 2, 16, 64>}, {transform_indices = @transform_1, window_bounds = array<i64: 1, 1, 16, 64>}, {transform_indices = @transform_2, window_bounds = array<i64: 1, 1, 16, 64>}, {transform_indices = @transform_3, window_bounds = array<i64: 1, 2, 16, 64>}]} {
    %0 = arith.index_cast %arg2 : i32 to index
    %1 = memref.load %arg3[%0] : memref<1xi32, #tpu.memory_space<smem>>
    %2 = arith.index_cast %arg2 : i32 to index
    %3 = memref.load %arg4[%2] : memref<1xi32, #tpu.memory_space<smem>>
    %c0_i32 = arith.constant 0 : i32
    %4 = arith.cmpi eq, %3, %c0_i32 : i32
    %5 = arith.extui %4 : i1 to i32
    %c0_i32_0 = arith.constant 0 : i32
    %6 = arith.cmpi ne, %5, %c0_i32_0 : i32
    scf.if %6 {
      %cst = arith.constant 0xFF800000 : f32
      %20 = vector.broadcast %cst : f32 to vector<32x1xf32>
      %c0_14 = arith.constant 0 : index
      %c0_15 = arith.constant 0 : index
      %21 = vector.load %arg9[%c0_14, %c0_15] : memref<32x1xf32, #tpu.memory_space<vmem>>, vector<32x1xf32>
      tpu.vector_store %arg9[%c0_14, %c0_15], %20 {strides = array<i32>} : memref<32x1xf32, #tpu.memory_space<vmem>>, vector<32x1xf32>,
      %cst_16 = arith.constant 0.000000e+00 : f32
      %22 = vector.broadcast %cst_16 : f32 to vector<32x1xf32>
      %c0_17 = arith.constant 0 : index
      %c0_18 = arith.constant 0 : index
      %23 = vector.load %arg10[%c0_17, %c0_18] : memref<32x1xf32, #tpu.memory_space<vmem>>, vector<32x1xf32>
      tpu.vector_store %arg10[%c0_17, %c0_18], %22 {strides = array<i32>} : memref<32x1xf32, #tpu.memory_space<vmem>>, vector<32x1xf32>,
      %cst_19 = arith.constant 0.000000e+00 : f32
      %24 = vector.broadcast %cst_19 : f32 to vector<32x64xf32>
      %c0_20 = arith.constant 0 : index
      %c0_21 = arith.constant 0 : index
      %25 = vector.load %arg11[%c0_20, %c0_21] : memref<32x64xf32, #tpu.memory_space<vmem>>, vector<32x64xf32>
      tpu.vector_store %arg11[%c0_20, %c0_21], %24 {strides = array<i32>} : memref<32x64xf32, #tpu.memory_space<vmem>>, vector<32x64xf32>,
    } else {
    }
    %c0 = arith.constant 0 : index
    %c0_1 = arith.constant 0 : index
    %c0_2 = arith.constant 0 : index
    %c0_3 = arith.constant 0 : index
    %7 = vector.load %arg5[%c0, %c0_1, %c0_2, %c0_3] : memref<1x2x16x64xbf16, #tpu.memory_space<vmem>>, vector<1x2x16x64xbf16>
    %8 = vector.shape_cast %7 : vector<1x2x16x64xbf16> to vector<2x16x64xbf16>
    %9 = vector.shape_cast %8 : vector<2x16x64xbf16> to vector<32x64xbf16>
    %c0_4 = arith.constant 0 : index
    %c0_5 = arith.constant 0 : index
    %c0_6 = arith.constant 0 : index
    %c0_7 = arith.constant 0 : index
    %10 = vector.load %arg6[%c0_4, %c0_5, %c0_6, %c0_7] : memref<1x1x16x64xbf16, #tpu.memory_space<vmem>>, vector<1x1x16x64xbf16>
    %11 = vector.shape_cast %10 : vector<1x1x16x64xbf16> to vector<16x64xbf16>
    %c0_8 = arith.constant 0 : index
    %c0_9 = arith.constant 0 : index
    %c0_10 = arith.constant 0 : index
    %c0_11 = arith.constant 0 : index
    %12 = vector.load %arg7[%c0_8, %c0_9, %c0_10, %c0_11] : memref<1x1x16x64xbf16, #tpu.memory_space<vmem>>, vector<1x1x16x64xbf16>
    %13 = vector.shape_cast %12 : vector<1x1x16x64xbf16> to vector<16x64xbf16>
    %14 = arith.cmpi ne, %3, %1 : i32
    %15 = arith.extui %14 : i1 to i32
    %c0_i32_12 = arith.constant 0 : i32
    %16 = arith.cmpi ne, %15, %c0_i32_12 : i32
    scf.if %16 {
      %cst = arith.constant dense<0.000000e+00> : vector<32x16xf32>
      %20 = tpu.matmul %9, %11, %cst {dimension_numbers = #tpu.dot_dimension_numbers<[1], [1], [0], [0], [0, 0, 1, 0], [], []>} : vector<32x64xbf16>, vector<16x64xbf16>, vector<32x16xf32> -> vector<32x16xf32>
      %c0_14 = arith.constant 0 : index
      %c0_15 = arith.constant 0 : index
      %21 = vector.load %arg9[%c0_14, %c0_15] : memref<32x1xf32, #tpu.memory_space<vmem>>, vector<32x1xf32>
      %cst_16 = arith.constant dense<0xFF800000> : vector<32xf32>
      %22 = vector.multi_reduction <maximumf>, %20, %cst_16 [1] : vector<32x16xf32> to vector<32xf32>
      %23 = vector.shape_cast %22 : vector<32xf32> to vector<32x1xf32>
      %24 = arith.maximumf %21, %23 : vector<32x1xf32>
      %25 = arith.subf %21, %24 : vector<32x1xf32>
      %26 = math.exp %25 : vector<32x1xf32>
      %27 = vector.broadcast %24 : vector<32x1xf32> to vector<32x16xf32>
      %28 = arith.subf %20, %27 : vector<32x16xf32>
      %29 = arith.truncf %28 : vector<32x16xf32> to vector<32x16xbf16>
      %30 = math.exp %29 : vector<32x16xbf16>
      %c0_17 = arith.constant 0 : index
      %c0_18 = arith.constant 0 : index
      %31 = vector.load %arg10[%c0_17, %c0_18] : memref<32x1xf32, #tpu.memory_space<vmem>>, vector<32x1xf32>
      %32 = arith.mulf %26, %31 : vector<32x1xf32>
      %33 = arith.extf %30 : vector<32x16xbf16> to vector<32x16xf32>
      %cst_19 = arith.constant dense<0.000000e+00> : vector<32xf32>
      %34 = vector.multi_reduction <add>, %33, %cst_19 [1] : vector<32x16xf32> to vector<32xf32>
      %35 = vector.shape_cast %34 : vector<32xf32> to vector<32x1xf32>
      %36 = arith.addf %32, %35 : vector<32x1xf32>
      %c0_20 = arith.constant 0 : index
      %c0_21 = arith.constant 0 : index
      %37 = vector.load %arg10[%c0_20, %c0_21] : memref<32x1xf32, #tpu.memory_space<vmem>>, vector<32x1xf32>
      tpu.vector_store %arg10[%c0_20, %c0_21], %36 {strides = array<i32>} : memref<32x1xf32, #tpu.memory_space<vmem>>, vector<32x1xf32>,
      %c0_22 = arith.constant 0 : index
      %c0_23 = arith.constant 0 : index
      %38 = vector.load %arg11[%c0_22, %c0_23] : memref<32x64xf32, #tpu.memory_space<vmem>>, vector<32x64xf32>
      %39 = vector.broadcast %26 : vector<32x1xf32> to vector<32x64xf32>
      %40 = arith.mulf %39, %38 : vector<32x64xf32>
      %cst_24 = arith.constant dense<0.000000e+00> : vector<32x64xf32>
      %41 = tpu.matmul %30, %13, %cst_24 {dimension_numbers = #tpu.dot_dimension_numbers<[1], [0], [0], [1], [0, 0, 1, 1], [], []>} : vector<32x16xbf16>, vector<16x64xbf16>, vector<32x64xf32> -> vector<32x64xf32>
      %42 = arith.addf %40, %41 : vector<32x64xf32>
      %c0_25 = arith.constant 0 : index
      %c0_26 = arith.constant 0 : index
      %43 = vector.load %arg11[%c0_25, %c0_26] : memref<32x64xf32, #tpu.memory_space<vmem>>, vector<32x64xf32>
      tpu.vector_store %arg11[%c0_25, %c0_26], %42 {strides = array<i32>} : memref<32x64xf32, #tpu.memory_space<vmem>>, vector<32x64xf32>,
      %c0_27 = arith.constant 0 : index
      %c0_28 = arith.constant 0 : index
      %44 = vector.load %arg9[%c0_27, %c0_28] : memref<32x1xf32, #tpu.memory_space<vmem>>, vector<32x1xf32>
      tpu.vector_store %arg9[%c0_27, %c0_28], %24 {strides = array<i32>} : memref<32x1xf32, #tpu.memory_space<vmem>>, vector<32x1xf32>,
    } else {
    }
    %17 = arith.cmpi eq, %3, %1 : i32
    %18 = arith.extui %17 : i1 to i32
    %c0_i32_13 = arith.constant 0 : i32
    %19 = arith.cmpi ne, %18, %c0_i32_13 : i32
    scf.if %19 {
      %cst = arith.constant dense<0.000000e+00> : vector<32x16xf32>
      %20 = tpu.matmul %9, %11, %cst {dimension_numbers = #tpu.dot_dimension_numbers<[1], [1], [0], [0], [0, 0, 1, 0], [], []>} : vector<32x64xbf16>, vector<16x64xbf16>, vector<32x16xf32> -> vector<32x16xf32>
      %21 = vector.shape_cast %20 : vector<32x16xf32> to vector<2x16x16xf32>
      %22 = tpu.iota {dimensions = array<i32: 0>} : vector<16x16xi32>
      %23 = tpu.iota {dimensions = array<i32: 1>} : vector<16x16xi32>
      %24 = arith.cmpi sle, %23, %22 : vector<16x16xi32>
      %25 = vector.shape_cast %24 : vector<16x16xi1> to vector<1x16x16xi1>
      %cst_14 = arith.constant -1.000000e+30 : f32
      %26 = vector.shape_cast %25 : vector<1x16x16xi1> to vector<1x16x16xi1>
      %27 = vector.broadcast %26 : vector<1x16x16xi1> to vector<2x16x16xi1>
      %28 = vector.broadcast %cst_14 : f32 to vector<2x16x16xf32>
      %29 = arith.select %27, %21, %28 : vector<2x16x16xi1>, vector<2x16x16xf32>
      %30 = vector.shape_cast %29 : vector<2x16x16xf32> to vector<32x16xf32>
      %c0_15 = arith.constant 0 : index
      %c0_16 = arith.constant 0 : index
      %31 = vector.load %arg9[%c0_15, %c0_16] : memref<32x1xf32, #tpu.memory_space<vmem>>, vector<32x1xf32>
      %cst_17 = arith.constant dense<0xFF800000> : vector<32xf32>
      %32 = vector.multi_reduction <maximumf>, %30, %cst_17 [1] : vector<32x16xf32> to vector<32xf32>
      %33 = vector.shape_cast %32 : vector<32xf32> to vector<32x1xf32>
      %34 = arith.maximumf %31, %33 : vector<32x1xf32>
      %35 = arith.subf %31, %34 : vector<32x1xf32>
      %36 = math.exp %35 : vector<32x1xf32>
      %37 = vector.broadcast %34 : vector<32x1xf32> to vector<32x16xf32>
      %38 = arith.subf %30, %37 : vector<32x16xf32>
      %39 = arith.truncf %38 : vector<32x16xf32> to vector<32x16xbf16>
      %40 = math.exp %39 : vector<32x16xbf16>
      %c0_18 = arith.constant 0 : index
      %c0_19 = arith.constant 0 : index
      %41 = vector.load %arg10[%c0_18, %c0_19] : memref<32x1xf32, #tpu.memory_space<vmem>>, vector<32x1xf32>
      %42 = arith.mulf %36, %41 : vector<32x1xf32>
      %43 = arith.extf %40 : vector<32x16xbf16> to vector<32x16xf32>
      %cst_20 = arith.constant dense<0.000000e+00> : vector<32xf32>
      %44 = vector.multi_reduction <add>, %43, %cst_20 [1] : vector<32x16xf32> to vector<32xf32>
      %45 = vector.shape_cast %44 : vector<32xf32> to vector<32x1xf32>
      %46 = arith.addf %42, %45 : vector<32x1xf32>
      %c0_21 = arith.constant 0 : index
      %c0_22 = arith.constant 0 : index
      %47 = vector.load %arg10[%c0_21, %c0_22] : memref<32x1xf32, #tpu.memory_space<vmem>>, vector<32x1xf32>
      tpu.vector_store %arg10[%c0_21, %c0_22], %46 {strides = array<i32>} : memref<32x1xf32, #tpu.memory_space<vmem>>, vector<32x1xf32>,
      %c0_23 = arith.constant 0 : index
      %c0_24 = arith.constant 0 : index
      %48 = vector.load %arg11[%c0_23, %c0_24] : memref<32x64xf32, #tpu.memory_space<vmem>>, vector<32x64xf32>
      %49 = vector.broadcast %36 : vector<32x1xf32> to vector<32x64xf32>
      %50 = arith.mulf %49, %48 : vector<32x64xf32>
      %cst_25 = arith.constant dense<0.000000e+00> : vector<32x64xf32>
      %51 = tpu.matmul %40, %13, %cst_25 {dimension_numbers = #tpu.dot_dimension_numbers<[1], [0], [0], [1], [0, 0, 1, 1], [], []>} : vector<32x16xbf16>, vector<16x64xbf16>, vector<32x64xf32> -> vector<32x64xf32>
      %52 = arith.addf %50, %51 : vector<32x64xf32>
      %c0_26 = arith.constant 0 : index
      %c0_27 = arith.constant 0 : index
      %53 = vector.load %arg11[%c0_26, %c0_27] : memref<32x64xf32, #tpu.memory_space<vmem>>, vector<32x64xf32>
      tpu.vector_store %arg11[%c0_26, %c0_27], %52 {strides = array<i32>} : memref<32x64xf32, #tpu.memory_space<vmem>>, vector<32x64xf32>,
      %c0_28 = arith.constant 0 : index
      %c0_29 = arith.constant 0 : index
      %54 = vector.load %arg9[%c0_28, %c0_29] : memref<32x1xf32, #tpu.memory_space<vmem>>, vector<32x1xf32>
      tpu.vector_store %arg9[%c0_28, %c0_29], %34 {strides = array<i32>} : memref<32x1xf32, #tpu.memory_space<vmem>>, vector<32x1xf32>,
      %c0_30 = arith.constant 0 : index
      %c0_31 = arith.constant 0 : index
      %55 = vector.load %arg10[%c0_30, %c0_31] : memref<32x1xf32, #tpu.memory_space<vmem>>, vector<32x1xf32>
      %56 = tpu.reciprocal %55 {approx = true} : vector<32x1xf32> -> vector<32x1xf32>
      %c0_32 = arith.constant 0 : index
      %c0_33 = arith.constant 0 : index
      %57 = vector.load %arg11[%c0_32, %c0_33] : memref<32x64xf32, #tpu.memory_space<vmem>>, vector<32x64xf32>
      %58 = vector.broadcast %56 : vector<32x1xf32> to vector<32x64xf32>
      %59 = arith.mulf %57, %58 : vector<32x64xf32>
      %60 = vector.shape_cast %59 : vector<32x64xf32> to vector<2x16x64xf32>
      %61 = arith.truncf %60 : vector<2x16x64xf32> to vector<2x16x64xbf16>
      %c0_34 = arith.constant 0 : index
      %c0_35 = arith.constant 0 : index
      %c0_36 = arith.constant 0 : index
      %c0_37 = arith.constant 0 : index
      %62 = vector.load %arg8[%c0_34, %c0_35, %c0_36, %c0_37] : memref<1x2x16x64xbf16, #tpu.memory_space<vmem>>, vector<1x2x16x64xbf16>
      %63 = vector.shape_cast %62 : vector<1x2x16x64xbf16> to vector<2x16x64xbf16>
      %64 = vector.shape_cast %61 : vector<2x16x64xbf16> to vector<1x2x16x64xbf16>
      tpu.vector_store %arg8[%c0_34, %c0_35, %c0_36, %c0_37], %64 {strides = array<i32>} : memref<1x2x16x64xbf16, #tpu.memory_space<vmem>>, vector<1x2x16x64xbf16>,
    } else {
    }
    return
  }
  func.func @transform_0(%arg0: i32, %arg1: i32, %arg2: i32, %arg3: memref<1xi32, #tpu.memory_space<smem>>, %arg4: memref<1xi32, #tpu.memory_space<smem>>) -> (i32, i32, i32, i32) {
    %0 = arith.index_cast %arg2 : i32 to index
    %1 = memref.load %arg3[%0] : memref<1xi32, #tpu.memory_space<smem>>
    %c0_i32 = arith.constant 0 : i32
    %c0_i32_0 = arith.constant 0 : i32
    return %arg0, %arg1, %1, %c0_i32 : i32, i32, i32, i32
  }
  func.func @transform_1(%arg0: i32, %arg1: i32, %arg2: i32, %arg3: memref<1xi32, #tpu.memory_space<smem>>, %arg4: memref<1xi32, #tpu.memory_space<smem>>) -> (i32, i32, i32, i32) {
    %0 = arith.index_cast %arg2 : i32 to index
    %1 = memref.load %arg4[%0] : memref<1xi32, #tpu.memory_space<smem>>
    %c0_i32 = arith.constant 0 : i32
    %c0_i32_0 = arith.constant 0 : i32
    return %arg0, %arg1, %1, %c0_i32 : i32, i32, i32, i32
  }
  func.func @transform_2(%arg0: i32, %arg1: i32, %arg2: i32, %arg3: memref<1xi32, #tpu.memory_space<smem>>, %arg4: memref<1xi32, #tpu.memory_space<smem>>) -> (i32, i32, i32, i32) {
    %0 = arith.index_cast %arg2 : i32 to index
    %1 = memref.load %arg4[%0] : memref<1xi32, #tpu.memory_space<smem>>
    %c0_i32 = arith.constant 0 : i32
    %c0_i32_0 = arith.constant 0 : i32
    return %arg0, %arg1, %1, %c0_i32 : i32, i32, i32, i32
  }
  func.func @transform_3(%arg0: i32, %arg1: i32, %arg2: i32, %arg3: memref<1xi32, #tpu.memory_space<smem>>, %arg4: memref<1xi32, #tpu.memory_space<smem>>) -> (i32, i32, i32, i32) {
    %0 = arith.index_cast %arg2 : i32 to index
    %1 = memref.load %arg3[%0] : memref<1xi32, #tpu.memory_space<smem>>
    %c0_i32 = arith.constant 0 : i32
    %c0_i32_0 = arith.constant 0 : i32
    return %arg0, %arg1, %1, %c0_i32 : i32, i32, i32, i32
  }
}

</mosaic_0001>

<bundles_post_ra>
// kernel: tpu_custom_call.1
= control target key start
LH: loop header
LB: loop body
LE: loop exit
PB: predicated region body
PF: predicated region fallthrough
CT: control target
= control target key end

     0   :  { %s2310_s0 = inlined_call_operand.<no memory space> [shape: s32[1], index: 0, kind: input, shape index: {}]   ;;  %s2311_s1 = inlined_call_operand.<no memory space> [shape: s32[1], index: 1, kind: input, shape index: {}]   ;;  %s2312_s2 = inlined_call_operand.hbm [shape: bf16[2,2,16,64], index: 2, kind: input, shape index: {}]   ;;  %s2313_s3 = inlined_call_operand.hbm [shape: bf16[2,1,16,64], index: 3, kind: input, shape index: {}]   ;;  %s2314_s4 = inlined_call_operand.hbm [shape: bf16[2,1,16,64], index: 4, kind: input, shape index: {}]   ;;  %s2315_s5 = inlined_call_operand.hbm [shape: bf16[2,2,16,64], index: 5, kind: output, shape index: {}]  }
   0x1   :  { %2338 = sst [smem:[#allocation30_spill]] %s2313_s3 }
   0x2   :  { %2339 = sst [smem:[#allocation31_spill]] %s2315_s5 }
   0x3   :  { %10 = sst [smem:[#allocation6]] %s2310_s0 }
   0x4   :  { %11 = sst [smem:[#allocation7]] %s2311_s1 }
   0x5   :  { %12 = vsyncpa [#allocation9], 0 }
   0x6   :  { %14 = vsyncpa [#allocation9 + $0x1], 0 }
   0x7   :  { %15 = vsyncpa [#allocation12], 0 }
   0x8   :  { %17 = vsyncpa [#allocation12 + $0x1], 0 }
   0x9   :  { %18 = vsyncpa [#allocation10], 0 }
   0xa   :  { %20 = vsyncpa [#allocation10 + $0x1], 0  ;;  %s1743_s22 = smov 0   ;;  %s1745_s23 = smov 0  }
   0xb   :  { %s1747_s24 = smov 0   ;;  %s1749_s25 = smov 0  }
   0xc   :  { %s1751_s26 = smov 0   ;;  %s1753_s0 = smov 0  }
   0xd   :  { %s1755_s27 = smov 0   ;;  %s1757_s1 = smov 0  }
   0xe   :  { %s1759_s28 = smov 0   ;;  %s1761_s29 = smov 0  }
   0xf   :  { %s1763_s30 = smov 0   ;;  %s1765_s6 = smov 0  }
  0x10   :  { %s1767_s7 = smov 0   ;;  %s1769_s8 = smov 0  }
  0x11   :  { %s1771_s9 = smov 0  }
  0x12 LB: > { %2340 = sst [smem:[#allocation19_spill]] %s1637_s22  ;;  %s1817_s10 = sadd.s32 4294967295, %s1693_s9   ;;  %s1693_s9 = sphi %s1771_s9, %s26_s9   ;;  %s1689_s8 = sphi %s1769_s8, %s2404_s8   ;;  %s1685_s7 = sphi %s1767_s7, %s2403_s7   ;;  %s1681_s6 = sphi %s1765_s6, %s2402_s6   ;;  %s1677_s30 = sphi %s1763_s30, %s2401_s30   ;;  %s1673_s29 = sphi %s1761_s29, %s2400_s29   ;;  %s1669_s28 = sphi %s1759_s28, %s2392_s28   ;;  %s1665_s1 = sphi %s1757_s1, %s2399_s1   ;;  %s1661_s27 = sphi %s1755_s27, %s2398_s27   ;;  %s1657_s0 = sphi %s1753_s0, %s2397_s0   ;;  %s1653_s26 = sphi %s1751_s26, %s2396_s26   ;;  %s1649_s25 = sphi %s1749_s25, %s2395_s25   ;;  %s1645_s24 = sphi %s1747_s24, %s2390_s24   ;;  %s1641_s23 = sphi %s1745_s23, %s2389_s23   ;;  %s1637_s22 = sphi %s1743_s22, %s2388_s22  }
  0x13   : > { %2341 = sst [smem:[#allocation20_spill]] %s1641_s23  ;;  %s1162_s11 = sadd.s32 4294967294, %s1693_s9  }
  0x14   : > { %2342 = sst [smem:[#allocation21_spill]] %s1645_s24  ;;  %s45_s12 = sadd.s32 1, %s1689_s8 }
  0x15   : > { %2343 = sst [smem:[#allocation22_spill]] %s1669_s28  ;;  %s1821_s13 = sld [smem:[#allocation6]] }
  0x16   : > { %2344 = sst [smem:[#allocation23_spill]] %s1685_s7  ;;  %p47_p0 = scmp.ge.s32.totalorder %s45_s12, 2 }
  0x17   : > { %p2328_p1 = scmp.eq.s32.totalorder %s1693_s9, 0  ;;  %p2327_p2 = scmp.eq.s32.totalorder %s1817_s10, 0 }
  0x18   : > { %s81_s14 = sld [smem:[#allocation7]]  ;;  %s2406_s12 = smov (%p47_p0, %s45_s12), 0 }
  0x19   : > { %2345 = sst [smem:[#allocation24_spill]] %s2406_s12  ;;  %s90_s15 = sadd.s32 1, %s1669_s28 }
  0x1a   : > { %p97_p3 = scmp.ne.s32.totalorder %s1669_s28, %s1665_s1  ;;  %s51_s16 = ssub.s32 %s1689_s8, %s2406_s12 }
  0x1b   : > { %p103_p4 = scmp.ne.s32.totalorder %s1665_s1, %s1661_s27  ;;  %p1845_p7 = scmp.eq.s32.totalorder %s51_s16, 0 }
  0x1c   : > { %p1835_p5 = por %p97_p3, %p2328_p1  ;;  %s154_s20 = sadd.s32 1, %s1645_s24 }
  0x1d   : > { %p1841_p6 = por %p103_p4, %p2327_p2  ;;  %p164_p8 = scmp.ne.s32.totalorder %s1645_s24, %s1641_s23 }
  0x1e   : > { %s1855_s21 = scalar_select %p1845_p7, %s1645_s24, %s154_s20  }
  0x1f   : > { %s2347_s18 = scalar_select %p1841_p6, 1, 0 }
  0x20   : > { %2350 = sst [smem:[#allocation26_spill]] %s1855_s21  ;;  %p165_p9 = scmp.eq.s32.totalorder %s1817_s10, 1 }
  0x21   : > { %2348 = sst [smem:[#allocation25_spill]] %s2347_s18  ;;  %p170_p10 = scmp.ne.s32.totalorder %s1641_s23, %s1637_s22 }
  0x22   : > { %s1860_s27 = scalar_select %p1845_p7, %s1669_s28, %s90_s15  }
  0x23   : > { %p171_p11 = scmp.eq.s32.totalorder %s1162_s11, 1  ;;  %p1866_p13 = por %p165_p9, %p164_p8 }
  0x24   : > { %2351 = sst [smem:[#allocation27_spill]] %s1860_s27  ;;  %p2326_p0 = scmp.lt.s32.totalorder %s1693_s9, 2 }
  0x25   : > { %s2352_s16 = scalar_select %p1866_p13, 1, 0 }
  0x26   : > { %p1871_p3 = por %p171_p11, %p170_p10  ;;  %s218_s20 = sand.u32 1, %s1693_s9  }
  0x27   : > { %2353 = sst [smem:[#allocation28_spill]] %s2352_s16  ;;  %s220_s21 = sand.u32 1, %s1669_s28  }
  0x28   : > { %s2354_s12 = scalar_select %p1871_p3, 1, 0 }
  0x29   : > { %s1169_s15 = sshll.u32 %s220_s21, 3  ;;  %s1170_s27 = sshll.u32 %s81_s14, 1 }
  0x2a   : > { %s1171_s24 = sshll.u32 %s1689_s8, 1  ;;  %s222_s11 = scalar_lea.vmem [#allocation11], %s1169_s15 }
  0x2b   : > { %s1878_s22 = sadd.s32 %s1171_s24, %s1170_s27  ;;  %s234_s5 = sshll.u32 %s222_s11, 4  ;;  %s1881_s5 = int_to_ptr.vmem [resolvable:$true] %s234_s5 }
  0x2c   : > { %s2331_s7 = sshll.u32 %s1878_s22, 6  ;;  %s2355_s3 = sld [smem:[#allocation30_spill]] }
  0x2d   : > { %p1894_p4 = pnand %p2326_p0, %p1835_p5  ;;  %s1899_s14 = scalar_lea.sflag [#allocation12], %s218_s20 }
  0x2f   : > { %p1443_p10 = pneg %p1894_p4 }
  0x32   : > { %s1888_s18 = scalar_lea.hbm %s2355_s3, %s2331_s7  ;;  %s1446_s27 = scalar_lea.hbm %s2355_s3, 256 }
  0x33   : > { %s1441_s21 = scalar_lea.hbm %s1888_s18, 128  ;;  %p1447_p5 = scmp.lt.u32.totalorder %s1888_s18, %s2355_s3 }
  0x34   : > { %p1442_p9 = scmp.ne.s32.totalorder %s1888_s18, %s1441_s21  ;;  %p1448_p0 = scmp.lt.u32.totalorder %s1446_s27, %s1441_s21 }
  0x35   : > { %p1450_p1 = scmp.lt.u32.totalorder %s1441_s21, %s1888_s18 }
  0x36   : > { %p1444_p11 = pnand %p1443_p10, %p1442_p9  ;;  %p1449_p2 = por %p1448_p0, %p1447_p5 }
  0x38   : > { %p1445_p12 = pneg %p1444_p11  ;;  %p1451_p8 = por %p1450_p1, %p1449_p2 }
  0x3a   : > { %p1452_p3 = pnand %p1451_p8, %p1445_p12 }
  0x3c   : > { %1455 = shalt.err (!%p1452_p3)
}
  0x3d   : > { %s1456_s20 = scalar_lea.vmem %s1881_s5, 128  ;;  %s1695_s11 = smov [#allocation11]  }
  0x3e   : > { %p1457_p9 = scmp.ne.s32.totalorder %s1881_s5, %s1456_s20  ;;  %s1461_s23 = sshll.u32 %s1695_s11, 4  ;;  %s1462_s23 = int_to_ptr.vmem [resolvable:$false] %s1461_s23 }
  0x3f   : > { %s1463_s17 = scalar_lea.vmem %s1462_s23, 256  ;;  %p1464_p6 = scmp.lt.s32.totalorder %s1881_s5, %s1462_s23 }
  0x40   : > { %p1459_p11 = pnand %p1457_p9, %p1443_p10  ;;  %p1465_p0 = scmp.lt.s32.totalorder %s1463_s17, %s1456_s20 }
  0x42   : > { %p1460_p13 = pneg %p1459_p11  ;;  %p1466_p5 = por %p1465_p0, %p1464_p6 }
  0x44   : > { %p1467_p1 = pnand %p1466_p5, %p1460_p13 }
  0x46   : > { %1470 = shalt.err (!%p1467_p1)
}
  0x47   : > { %s2332_s21 = smov 64   ;;  %s2334_s27 = smov 4  }
  0x48   : > { %1267 = dma.hbm_to_vmem [thread:$0]  (!%p1894_p4), %s1888_s18, 128, %s1881_s5, %s1899_s14, %s2332_s21, %s2332_s21, %s2334_s27  }
  0x49   : > { %p268_p2 = scmp.lt.s32.totalorder %s1693_s9, 3  ;;  %p2357_p6 = scmp.ge.s32.totalorder %s1693_s9, 1 }
  0x4a   : > { %s58_s15 = sadd.s32 1, %s1681_s6  ;;  %p65_p13 = scmp.ne.s32.totalorder %s1681_s6, %s1677_s30 }
  0x4b   : > { %p1933_p12 = pnand %p2357_p6, %p268_p2  ;;  %p2360_p3 = scmp.eq.s32.totalorder %s1693_s9, 0 }
  0x4c   : > { %s1943_s20 = scalar_select %p1845_p7, %s1681_s6, %s58_s15  }
  0x4d   : > { %s2358_s16 = scalar_select %p1933_p12, 1, 0 }
  0x4e   : > { %2359 = sst [smem:[#allocation29_spill]] %s1943_s20  ;;  %p1947_p8 = por %p2360_p3, %p65_p13 }
  0x4f   : > { %p71_p10 = scmp.ne.s32.totalorder %s1677_s30, %s1673_s29  ;;  %s191_s5 = sand.u32 1, %s1681_s6  }
  0x50   : > { %s1166_s18 = sshll.u32 %s1821_s13, 1  ;;  %p2362_p4 = scmp.eq.s32.totalorder %s1817_s10, 0 }
  0x51   : > { %s1165_s23 = sshll.u32 %s191_s5, 4  ;;  %s1167_s17 = sshll.u32 %s1689_s8, 2 }
  0x52   : > { %p1957_p9 = por %p2362_p4, %p71_p10  ;;  %s205_s7 = sadd.s32 %s1167_s17, %s1166_s18 }
  0x53   : > { %s1168_s21 = sshll.u32 %s205_s7, 6  ;;  %s195_s15 = scalar_lea.vmem [#allocation8], %s1165_s23 }
  0x54   : > { %s2363_s24 = scalar_select %p1957_p9, 1, 0 }
  0x55   : > { %s208_s27 = sshll.u32 %s195_s15, 4  ;;  %s1965_s28 = scalar_lea.hbm %s2312_s2, %s1168_s21  ;;  %s1967_s27 = int_to_ptr.vmem [resolvable:$true] %s208_s27 }
  0x56   : > { %p2364_p11 = scmp.lt.s32.totalorder %s1693_s9, 2  ;;  %s1977_s7 = scalar_lea.sflag [#allocation9], %s191_s5 }
  0x57   : > { %s1471_s13 = scalar_lea.hbm %s1965_s28, 256  ;;  %s1476_s20 = scalar_lea.hbm %s2312_s2, 512 }
  0x58   : > { %p1973_p0 = pnand %p2364_p11, %p1947_p8  ;;  %p1472_p5 = scmp.ne.s32.totalorder %s1965_s28, %s1471_s13 }
  0x59   : > { %p1477_p13 = scmp.lt.u32.totalorder %s1965_s28, %s2312_s2  ;;  %p1478_p3 = scmp.lt.u32.totalorder %s1476_s20, %s1471_s13 }
  0x5a   : > { %p1473_p1 = pneg %p1973_p0  ;;  %p1480_p10 = scmp.lt.u32.totalorder %s1471_s13, %s1965_s28 }
  0x5b   : > { %p1479_p8 = por %p1478_p3, %p1477_p13 }
  0x5c   : > { %p1474_p2 = pnand %p1473_p1, %p1472_p5 }
  0x5d   : > { %p1481_p4 = por %p1480_p10, %p1479_p8 }
  0x5e   : > { %p1475_p6 = pneg %p1474_p2 }
  0x60   : > { %p1482_p11 = pnand %p1481_p4, %p1475_p6 }
  0x62   : > { %1485 = shalt.err (!%p1482_p11)
}
  0x63   : > { %s1486_s5 = scalar_lea.vmem %s1967_s27, 256  ;;  %s1698_s23 = smov [#allocation8]  }
  0x64   : > { %p1487_p5 = scmp.ne.s32.totalorder %s1967_s27, %s1486_s5  ;;  %s1491_s17 = sshll.u32 %s1698_s23, 4  ;;  %s1492_s17 = int_to_ptr.vmem [resolvable:$false] %s1491_s17 }
  0x65   : > { %s1493_s15 = scalar_lea.vmem %s1492_s17, 512  ;;  %p1494_p12 = scmp.lt.s32.totalorder %s1967_s27, %s1492_s17 }
  0x66   : > { %p1489_p2 = pnand %p1487_p5, %p1473_p1  ;;  %p1495_p13 = scmp.lt.s32.totalorder %s1493_s15, %s1486_s5 }
  0x68   : > { %p1490_p9 = pneg %p1489_p2  ;;  %p1496_p3 = por %p1495_p13, %p1494_p12 }
  0x6a   : > { %p1497_p8 = pnand %p1496_p3, %p1490_p9 }
  0x6c   : > { %1500 = shalt.err (!%p1497_p8)
}
  0x6d   : > { %s2366_s13 = smov 4   ;;  %s2367_s3 = smov 64  }
  0x6e   : > { %1264 = dma.hbm_to_vmem [thread:$0]  (!%p1973_p0), %s1965_s28, 256, %s1967_s27, %s1977_s7, %s2367_s3, %s2367_s3, %s2366_s13  }
  0x6f   : > { %s122_s29 = sadd.s32 1, %s1657_s0  ;;  %p129_p12 = scmp.ne.s32.totalorder %s1657_s0, %s1653_s26 }
  0x70   : > { %s2014_s21 = scalar_select %p1845_p7, %s1657_s0, %s122_s29  }
  0x71   : > { %p2368_p9 = scmp.eq.s32.totalorder %s1693_s9, 0  ;;  %p135_p6 = scmp.ne.s32.totalorder %s1653_s26, %s1649_s25 }
  0x72   : > { %s2369_s20 = sshll.u32 %s1878_s22, 6  ;;  %s246_s23 = sand.u32 1, %s1657_s0  }
  0x73   : > { %p131_p1 = por %p129_p12, %p2368_p9  ;;  %s2025_s5 = scalar_lea.hbm %s2314_s4, %s2369_s20 }
  0x74   : > { %p2370_p10 = scmp.eq.s32.totalorder %s1817_s10, 0  ;;  %s1173_s19 = sshll.u32 %s246_s23, 3 }
  0x75   : > { %p2372_p7 = scmp.lt.s32.totalorder %s1693_s9, 2  ;;  %s248_s22 = scalar_lea.vmem [#allocation13], %s1173_s19 }
  0x76   : > { %p2030_p0 = por %p135_p6, %p2370_p10  ;;  %s260_s27 = sshll.u32 %s248_s22, 4  ;;  %s2040_s27 = int_to_ptr.vmem [resolvable:$true] %s260_s27 }
  0x77   : > { %p2036_p4 = pnand %p2372_p7, %p131_p1  ;;  %s1501_s7 = scalar_lea.hbm %s2025_s5, 128 }
  0x78   : > { %p1502_p11 = scmp.ne.s32.totalorder %s2025_s5, %s1501_s7  ;;  %s1506_s29 = scalar_lea.hbm %s2314_s4, 256 }
  0x79   : > { %p1503_p5 = pneg %p2036_p4  ;;  %p1507_p3 = scmp.lt.u32.totalorder %s2025_s5, %s2314_s4 }
  0x7a   : > { %p1508_p8 = scmp.lt.u32.totalorder %s1506_s29, %s1501_s7  ;;  %p1510_p9 = scmp.lt.u32.totalorder %s1501_s7, %s2025_s5 }
  0x7b   : > { %p1504_p2 = pnand %p1503_p5, %p1502_p11 }
  0x7c   : > { %p1509_p12 = por %p1508_p8, %p1507_p3 }
  0x7d   : > { %p1505_p13 = pneg %p1504_p2 }
  0x7e   : > { %p1511_p1 = por %p1510_p9, %p1509_p12 }
  0x80   : > { %p1512_p6 = pnand %p1511_p1, %p1505_p13 }
  0x82   : > { %1515 = shalt.err (!%p1512_p6)
}
  0x83   : > { %s1516_s18 = scalar_lea.vmem %s2040_s27, 128  ;;  %s1699_s23 = smov [#allocation13]  }
  0x84   : > { %p1517_p10 = scmp.ne.s32.totalorder %s2040_s27, %s1516_s18  ;;  %s1521_s19 = sshll.u32 %s1699_s23, 4  ;;  %s1522_s19 = int_to_ptr.vmem [resolvable:$false] %s1521_s19 }
  0x85   : > { %s1523_s22 = scalar_lea.vmem %s1522_s19, 256  ;;  %p1524_p2 = scmp.lt.s32.totalorder %s2040_s27, %s1522_s19 }
  0x86   : > { %p1519_p7 = pnand %p1517_p10, %p1503_p5  ;;  %p1525_p3 = scmp.lt.s32.totalorder %s1523_s22, %s1516_s18 }
  0x88   : > { %p1520_p11 = pneg %p1519_p7  ;;  %p1526_p8 = por %p1525_p3, %p1524_p2 }
  0x8a   : > { %p1527_p12 = pnand %p1526_p8, %p1520_p11 }
  0x8c   : > { %1530 = shalt.err (!%p1527_p12)
}
  0x8d   : > { %1270 = dma.hbm_to_vmem [thread:$0]  (!%p2036_p4), %s2025_s5, 128, %s2040_s27, %s1899_s14, %s2367_s3, %s2367_s3, %s2366_s13  }
  0x8e   : > { %p2374_p5 = scmp.ne.s32.totalorder %s2358_s16, 0 }
  0x8f   : > { %s274_s7 = sand.u32 (!%p2374_p5), 1, %s1677_s30   ;;  %p2375_p13 = scmp.ne.s32.totalorder (!%p2374_p5), %s2363_s24, 0 }
  0x90   : > { %272 = sbr.rel (%p2374_p5) target bundleno = 1779 (0x6f3), region = 32  ;;  %s1178_s17 = sshll.u32 (!%p2374_p5), %s274_s7, 4 }
  0x91   : > { %s275_s15 = scalar_lea.sflag (!%p2374_p5), [#allocation9], %s274_s7  ;;  %s2074_s29 = scalar_lea.vmem (!%p2374_p5), [#allocation8], %s1178_s17 }
  0x97   : > { %1620 = dma.done.wait (%p2375_p13), %s275_s15, 256  }
  0x98   : > { %1622 = vsyncadd (%p2375_p13), %s275_s15, 4294967040  ;;  %s2376_s25 = sld [smem:[#allocation25_spill]]  ;;  %s283_s20 = sand.u32 1, %s1817_s10  }
  0x99   : > { %s285_s14 = sand.u32 1, %s1665_s1   ;;  %s284_s16 = scalar_lea.sflag [#allocation12], %s283_s20 }
  0x9a   : > { %s2082_s13 = sshll.u32 %s285_s14, 3 }
  0x9b   : > { %s287_s3 = scalar_lea.vmem [#allocation11], %s2082_s13 }
  0x9e   : > { %p2377_p4 = scmp.ne.s32.totalorder %s2376_s25, 0 }
  0xa0   : > { %1624 = dma.done.wait (%p2377_p4), %s284_s16, 128  }
  0xa1   : > { %1626 = vsyncadd (%p2377_p4), %s284_s16, 4294967168  ;;  %s294_s5 = sand.u32 1, %s1653_s26  }
  0xa2   : > { %s2090_s24 = sshll.u32 %s294_s5, 3 }
  0xa3   : > { %s296_s27 = scalar_lea.vmem [#allocation13], %s2090_s24 }
  0xa4   : > { %1628 = dma.done.wait (%p2030_p0), %s284_s16, 128  }
  0xa5   : > { %1630 = vsyncadd (%p2030_p0), %s284_s16, 4294967168  ;;  %s2378_s10 = sld [smem:[#allocation20_spill]]  ;;  %s2098_s18 = sld [smem:[#allocation6]] }
  0xa6   : > { %s2100_s23 = sld [smem:[#allocation7]] }
  0xab   : > { %s326_s11 = sand.u32 1, %s2378_s10  }
  0xac   : > { %s1181_s19 = sshll.u32 %s326_s11, 4  ;;  %p1182_p9 = scmp.ne.s32.totalorder %s2100_s23, 0 }
  0xad   : > { %s2104_s22 = scalar_lea.vmem [#allocation14], %s1181_s19  ;;  %vm346_vm0 = vcmask (!%p1182_p9), 7168   ;;  %vm355_vm1 = vcmask (!%p1182_p9), 523264   ;;  %v1700_v0 = vmov (!%p1182_p9), -inf   ;;  %v1701_v1 = vmov (!%p1182_p9), 0.0  }
  0xae   : > { %345 = sbr.rel (%p1182_p9) target bundleno = 181 (0xb5), region = 48  ;;  %347 = vst.msk [vmem:[#allocation2] sm:$0xff] (!%p1182_p9), %vm346_vm0, %v1700_v0  ;;  %348 = vst.msk [vmem:[#allocation2 + $0x8] sm:$0xff] (!%p1182_p9), %vm346_vm0, %v1700_v0 }
  0xaf   : > { %349 = vst.msk [vmem:[#allocation2 + $0x10] sm:$0xff] (!%p1182_p9), %vm346_vm0, %v1700_v0  ;;  %350 = vst.msk [vmem:[#allocation2 + $0x18] sm:$0xff] (!%p1182_p9), %vm346_vm0, %v1700_v0 }
  0xb0   : > { %351 = vst.msk [vmem:[#allocation3] sm:$0xff] (!%p1182_p9), %vm346_vm0, %v1701_v1  ;;  %352 = vst.msk [vmem:[#allocation3 + $0x8] sm:$0xff] (!%p1182_p9), %vm346_vm0, %v1701_v1 }
  0xb1   : > { %353 = vst.msk [vmem:[#allocation3 + $0x10] sm:$0xff] (!%p1182_p9), %vm346_vm0, %v1701_v1  ;;  %354 = vst.msk [vmem:[#allocation3 + $0x18] sm:$0xff] (!%p1182_p9), %vm346_vm0, %v1701_v1 }
  0xb2   : > { %356 = vst.msk [vmem:[#allocation4] sm:$0xff] (!%p1182_p9), %vm355_vm1, %v1701_v1  ;;  %357 = vst.msk [vmem:[#allocation4 + $0x8] sm:$0xff] (!%p1182_p9), %vm355_vm1, %v1701_v1 }
  0xb3   : > { %358 = vst.msk [vmem:[#allocation4 + $0x10] sm:$0xff] (!%p1182_p9), %vm355_vm1, %v1701_v1  ;;  %359 = vst.msk [vmem:[#allocation4 + $0x18] sm:$0xff] (!%p1182_p9), %vm355_vm1, %v1701_v1 }
  0xb5 PF: > { %v2108_v2 = vld [vmem:[%s2074_s29] sm:$0xf]  ;;  %v2111_v3 = vld [vmem:[%s2074_s29 + $0x4] sm:$0xf]  ;;  %v2114_v4 = vld [vmem:[%s2074_s29 + $0x8] sm:$0xf]  ;;  %p1183_p0 = scmp.eq.s32.totalorder %s2100_s23, %s2098_s18 }
  0xb6   : > { %v2117_v5 = vld [vmem:[%s2074_s29 + $0xc] sm:$0xf]  ;;  %v2121_v6 = vld [vmem:[%s287_s3] sm:$0xf]  ;;  %v2125_v7 = vld [vmem:[%s287_s3 + $0x4] sm:$0xf]  ;;  %v1184_v11 = vcombine.low (!%p1183_p0), %v2108_v2, %v2111_v3 }
  0xb7   : > { %v2129_v8 = vld [vmem:[%s296_s27] sm:$0xf]  ;;  %v2133_v9 = vld [vmem:[%s296_s27 + $0x4] sm:$0xf]  ;;  %371 = sbr.rel (%p1183_p0) target bundleno = 923 (0x39b), region = 52  ;;  %v1186_v10 = vcombine.low (!%p1183_p0), %v2121_v6, %v2125_v7  ;;  %vm387_vm2 = vcmask (!%p1183_p0), 523264   ;;  %v1185_v13 = vcombine.low (!%p1183_p0), %v2114_v4, %v2117_v5 }
  0xb8   : > { %1229 = vmatprep.mubr.msk.bf16.mxu0 (!%p1183_p0), %vm387_vm2, %v1184_v11  ;;  %vm450_vm3 = vcmask (!%p1183_p0), 130048   ;;  %v1702_v22 = vmov (!%p1183_p0), 0   ;;  %v2151_v23 = vld [vmem:[#allocation2 + $0x10] sm:$0xff] (!%p1183_p0)  ;;  %v446_v24 = vld [vmem:[#allocation2] sm:$0xff] (!%p1183_p0)  ;;  %vm539_vm4 = vcmask (!%p1183_p0), 7168   ;;  %v449_v29 = vld [vmem:[#allocation2 + $0x18] sm:$0xff] (!%p1183_p0)  ;;  %v1189_v41 = vcombine.low (!%p1183_p0), %v2129_v8, %v2133_v9 }
  0xb9   : > { %1251 = vmatprep.subr.msk.bf16.mxu0 (!%p1183_p0), %vm387_vm2, %v1186_v10  ;;  %v395_v12 = vsel (!%p1183_p0), %vm387_vm2, %v1186_v10, 0  ;;  %1406 = vset.pattern.permute.xlu1 (!%p1183_p0), %v1702_v22  ;;  %v447_v31 = vld [vmem:[#allocation2 + $0x8] sm:$0xff] (!%p1183_p0) }
  0xba   : > { %1228 = vmatpush3.bf16.xpose.msra.mxu0 (!%p1183_p0), %v395_v12  ;;  %1405 = vset.pattern.permute.xlu0 (!%p1183_p0), %v1702_v22  ;;  %v514_v22 = vld [vmem:[#allocation3 + $0x18] sm:$0xff] (!%p1183_p0) }
  0xbb   : > { %1233 = vmatprep.subr.bf16.mxu1 (!%p1183_p0), %v1189_v41 }
  0xbc   : > { %1234 = vmatpush3.bf16.msra.mxu1 (!%p1183_p0), %v1189_v41 }
  0xc1   : > { %1230 = vmatmul.mubr.msk.bf16.vlgmr.msra.gmra.mrb[0].mxu0 %vm387_vm2, %v1185_v13 }
 0x194   : > { %v1231_v14 = vpop.f32.mrb[0].mxu0 }
 0x195   : > { %v431_v15 = vpop.f32.mrb[1].mxu0  ;;  %v457_v16 = vsel %vm450_vm3, %v1231_v14, -inf }
 0x196   : > { %458 = vmax.xlane.f32.xlu1 %v457_v16  ;;  %v1232_v17 = vpop.f32.mrb[2].mxu0  ;;  %v451_v18 = vsel %vm450_vm3, %v431_v15, -inf }
 0x197   : > { %452 = vmax.xlane.f32.xlu0 %v451_v18  ;;  %v434_v19 = vpop.f32.mrb[3].mxu0  ;;  %v460_v20 = vsel %vm450_vm3, %v1232_v17, -inf  ;;  %v513_v18 = vld [vmem:[#allocation3 + $0x10] sm:$0xff] }
 0x198   : > { %v454_v21 = vsel %vm450_vm3, %v434_v19, -inf }
 0x19a   : > { %461 = vmax.xlane.f32.xlu1 %v460_v20 }
 0x19b   : > { %455 = vmax.xlane.f32.xlu0 %v454_v21 }
 0x223   : > { %v459_v25 = vpop.xlane.xlu1 %458 }
 0x224   : > { %v465_v26 = vmax.f32 %v2151_v23, %v459_v25  ;;  %v453_v27 = vpop.xlane.xlu0 %452 }
 0x225   : > { %v463_v28 = vmax.f32 %v446_v24, %v453_v27 }
 0x226   : > { %v469_v30 = vsub.f32 %v2151_v23, %v465_v26  ;;  %643 = vst.msk [vmem:[#allocation2 + $0x10] sm:$0xff] %vm539_vm4, %v465_v26  ;;  %491 = vperm.xlu1 %1406, %v465_v26   ;;  %v511_v26 = vld [vmem:[#allocation3] sm:$0xff] }
 0x227   : > { %v467_v32 = vsub.f32 %v446_v24, %v463_v28  ;;  %641 = vst.msk [vmem:[#allocation2] sm:$0xff] %vm539_vm4, %v463_v28  ;;  %v462_v33 = vpop.xlane.xlu1 %461  ;;  %481 = vperm.xlu0 %1405, %v463_v28  }
 0x228   : > { %v466_v34 = vmax.f32 %v449_v29, %v462_v33  ;;  %v456_v35 = vpop.xlane.xlu0 %455  ;;  %v475_v1 = vmul.f32 1.442695, %v469_v30  ;;  %v544_v33 = vld [vmem:[#allocation4] sm:$0xff] }
 0x229   : > { %v471_v36 = vmul.f32 1.442695, %v467_v32  ;;  %v464_v37 = vmax.f32 %v447_v31, %v456_v35  ;;  %v546_v32 = vld [vmem:[#allocation4 + $0x10] sm:$0xff] }
 0x22a   : > { %v470_v38 = vsub.f32 %v449_v29, %v466_v34  ;;  %644 = vst.msk [vmem:[#allocation2 + $0x18] sm:$0xff] %vm539_vm4, %v466_v34 }
 0x22b   : > { %1407 = vpow2.f32 %v471_v36  ;;  %v468_v39 = vsub.f32 %v447_v31, %v464_v37  ;;  %642 = vst.msk [vmem:[#allocation2 + $0x8] sm:$0xff] %vm539_vm4, %v464_v37  ;;  %486 = vperm.xlu1 %1406, %v464_v37   ;;  %v545_v36 = vld [vmem:[#allocation4 + $0x8] sm:$0xff] }
 0x22c   : > { %v477_v10 = vmul.f32 1.442695, %v470_v38 }
 0x22d   : > { %v473_v61 = vmul.f32 1.442695, %v468_v39 }
 0x22f   : > { %496 = vperm.xlu1 %1406, %v466_v34   ;;  %v547_v34 = vld [vmem:[#allocation4 + $0x18] sm:$0xff] }
 0x235   : > { %v2159_v40 = vpop.eup %1407 }
 0x236   : > { %550 = vperm.xlu1 %1406, %v2159_v40   ;;  %v515_v28 = vmul.f32 %v2159_v40, %v511_v26 }
 0x2a5   : > { %v492_v42 = vpop.permute.xlu1 %491 }
 0x2a6   : > { %v482_v43 = vpop.permute.xlu0 %481  ;;  %v501_v49 = vsub.f32 %v1231_v14, %v492_v42  ;;  %v512_v14 = vld [vmem:[#allocation3 + $0x8] sm:$0xff] }
 0x2a7   : > { %v499_v45 = vsub.f32 %v431_v15, %v482_v43 }
 0x2aa   : > { %v487_v44 = vpop.permute.xlu1 %486 }
 0x2ab   : > { %v500_v46 = vsub.f32 %v434_v19, %v487_v44 }
 0x2ad   : > { %v503_v47 = vpack.c.bf16 %v500_v46, %v499_v45 }
 0x2ae   : > { %v497_v48 = vpop.permute.xlu1 %496 }
 0x2af   : > { %v506_v50 = vmul.bf16 1069105081, %v503_v47  ;;  %v502_v51 = vsub.f32 %v1232_v17, %v497_v48 }
 0x2b1   : > { %1409 = vpow.bf16 %v506_v50  ;;  %v504_v52 = vpack.c.bf16 %v502_v51, %v501_v49 }
 0x2b3   : > { %v509_v53 = vmul.bf16 1069105081, %v504_v52 }
 0x2b5   : > { %1411 = vpow.bf16 %v509_v53  ;;  %v551_v16 = vpop.permute.xlu1 %550 }
 0x2b6   : > { %1413 = vpow2.f32 %v473_v61  ;;  %v568_v39 = vmul.f32 %v551_v16, %v544_v33 }
 0x2b7   : > { %1415 = vpow2.f32 %v475_v1 }
 0x2b8   : > { %1417 = vpow2.f32 %v477_v10 }
 0x2bc   : > { %v1410_v54 = vpop.eup %1409 }
 0x2bd   : > { %1235 = vmatprep.mubr.msk.bf16.mxu1 %vm450_vm3, %v1410_v54  ;;  %v520_v55 = vunpack.c.h.bf16 %v1410_v54  ;;  %v519_v63 = vunpack.c.l.bf16 %v1410_v54 }
 0x2bf   : > { %v526_v56 = vsel %vm450_vm3, %v520_v55, 0.0  ;;  %v523_v0 = vsel %vm450_vm3, %v519_v63, 0.0 }
 0x2c0   : > { %v1412_v57 = vpop.eup %1411  ;;  %527 = vadd.xlane.f32.xlu0 %v526_v56 }
 0x2c1   : > { %1236 = vmatmul.mubr.msk.bf16.vlgmr.msra.gmra.mrb[0].mxu1 %vm450_vm3, %v1412_v57  ;;  %v521_v58 = vunpack.c.l.bf16 %v1412_v57  ;;  %v522_v60 = vunpack.c.h.bf16 %v1412_v57  ;;  %v1414_v11 = vpop.eup %1413 }
 0x2c2   : > { %v1416_v12 = vpop.eup %1415  ;;  %v516_v15 = vmul.f32 %v1414_v11, %v512_v14 }
 0x2c3   : > { %v529_v59 = vsel %vm450_vm3, %v521_v58, 0.0  ;;  %v532_v62 = vsel %vm450_vm3, %v522_v60, 0.0  ;;  %v1418_v13 = vpop.eup %1417  ;;  %v517_v20 = vmul.f32 %v1416_v12, %v513_v18 }
 0x2c4   : > { %530 = vadd.xlane.f32.xlu1 %v529_v59  ;;  %v518_v24 = vmul.f32 %v1418_v13, %v514_v22 }
 0x2c8   : > { %533 = vadd.xlane.f32.xlu1 %v532_v62 }
 0x2cc   : > { %524 = vadd.xlane.f32.xlu1 %v523_v0 }
 0x2d6   : > { %555 = vperm.xlu0 %1405, %v1414_v11  }
 0x2dd   : > { %560 = vperm.xlu1 %1406, %v1416_v12  }
 0x2e1   : > { %565 = vperm.xlu1 %1406, %v1418_v13  }
 0x34d   : > { %v528_v17 = vpop.xlane.xlu0 %527 }
 0x34e   : > { %v536_v19 = vadd.f32 %v528_v17, %v516_v15 }
 0x350   : > { %541 = vst.msk [vmem:[#allocation3 + $0x8] sm:$0xff] %vm539_vm4, %v536_v19 }
 0x351   : > { %v531_v21 = vpop.xlane.xlu1 %530 }
 0x352   : > { %v537_v23 = vadd.f32 %v531_v21, %v517_v20 }
 0x354   : > { %542 = vst.msk [vmem:[#allocation3 + $0x10] sm:$0xff] %vm539_vm4, %v537_v23 }
 0x355   : > { %v534_v25 = vpop.xlane.xlu1 %533  ;;  %v556_v37 = vpop.permute.xlu0 %555 }
 0x356   : > { %v538_v27 = vadd.f32 %v534_v25, %v518_v24  ;;  %v569_v45 = vmul.f32 %v556_v37, %v545_v36 }
 0x358   : > { %543 = vst.msk [vmem:[#allocation3 + $0x18] sm:$0xff] %vm539_vm4, %v538_v27 }
 0x359   : > { %v525_v29 = vpop.xlane.xlu1 %524 }
 0x35a   : > { %v535_v30 = vadd.f32 %v525_v29, %v515_v28 }
 0x35c   : > { %540 = vst.msk [vmem:[#allocation3] sm:$0xff] %vm539_vm4, %v535_v30 }
 0x35d   : > { %v561_v31 = vpop.permute.xlu1 %560 }
 0x35e   : > { %v570_v38 = vmul.f32 %v561_v31, %v546_v32 }
 0x361   : > { %v566_v35 = vpop.permute.xlu1 %565 }
 0x362   : > { %v571_v42 = vmul.f32 %v566_v35, %v547_v34 }
 0x394   : > { %v1237_v41 = vpop.f32.mrb[0].mxu1 }
 0x395   : > { %v635_v43 = vadd.f32 %v1237_v41, %v570_v38  ;;  %v618_v44 = vpop.f32.mrb[1].mxu1 }
 0x396   : > { %v633_v46 = vadd.f32 %v618_v44, %v568_v39  ;;  %v1238_v40 = vpop.f32.mrb[2].mxu1 }
 0x397   : > { %639 = vst.msk [vmem:[#allocation4 + $0x10] sm:$0xff] %vm387_vm2, %v635_v43  ;;  %v636_v47 = vadd.f32 %v1238_v40, %v571_v42  ;;  %v621_v48 = vpop.f32.mrb[3].mxu1 }
 0x398   : > { %637 = vst.msk [vmem:[#allocation4] sm:$0xff] %vm387_vm2, %v633_v46  ;;  %v634_v49 = vadd.f32 %v621_v48, %v569_v45 }
 0x399   : > { %640 = vst.msk [vmem:[#allocation4 + $0x18] sm:$0xff] %vm387_vm2, %v636_v47 }
 0x39a   : > { %638 = vst.msk [vmem:[#allocation4 + $0x8] sm:$0xff] %vm387_vm2, %v634_v49 }
 0x39b PF: > { %p1192_p1 = scmp.ne.s32.totalorder %s2100_s23, %s2098_s18 }
 0x39c   : > { %v1195_v50 = vcombine.low (!%p1192_p1), %v2121_v6, %v2125_v7  ;;  %vm664_vm5 = vcmask (!%p1192_p1), 523264   ;;  %v1193_v51 = vcombine.low (!%p1192_p1), %v2108_v2, %v2111_v3  ;;  %v1194_v53 = vcombine.low (!%p1192_p1), %v2114_v4, %v2117_v5  ;;  %v740_v1 = vld [vmem:[#allocation2 + $0x10] sm:$0xff] (!%p1192_p1)  ;;  %v738_v10 = vld [vmem:[#allocation2] sm:$0xff] (!%p1192_p1)  ;;  %v741_v15 = vld [vmem:[#allocation2 + $0x18] sm:$0xff] (!%p1192_p1) }
 0x39d   : > { %648 = sbr.rel (%p1192_p1) target bundleno = 1750 (0x6d6), region = 56  ;;  %v723_v54 = vlaneseq (!%p1192_p1)  ;;  %vm742_vm7 = vcmask (!%p1192_p1), 130048   ;;  %v1703_v0 = vmov (!%p1192_p1), 0   ;;  %vm831_vm9 = vcmask (!%p1192_p1), 7168   ;;  %v739_v17 = vld [vmem:[#allocation2 + $0x8] sm:$0xff] (!%p1192_p1) }
 0x39e   : > { %1252 = vmatprep.subr.msk.bf16.mxu0 (!%p1192_p1), %vm664_vm5, %v1195_v50  ;;  %v672_v52 = vsel (!%p1192_p1), %vm664_vm5, %v1195_v50, 0  ;;  %1241 = vmatprep.mubr.msk.bf16.mxu0 (!%p1192_p1), %vm664_vm5, %v1193_v51  ;;  %v1198_v25 = vcombine.low (!%p1192_p1), %v2129_v8, %v2133_v9  ;;  %vm989_vm10 = vcmask (!%p1192_p1), 519168  }
 0x39f   : > { %1240 = vmatpush3.bf16.xpose.msra.mxu0 (!%p1192_p1), %v672_v52  ;;  %v724_v55 = vshrl.u32 (!%p1192_p1), %v723_v54, 7  ;;  %v727_v56 = vand.u32 (!%p1192_p1), 127, %v723_v54  ;;  %1420 = vset.pattern.permute.xlu1 (!%p1192_p1), %v1703_v0  ;;  %v804_v54 = vld [vmem:[#allocation3 + $0x8] sm:$0xff] (!%p1192_p1) }
 0x3a0   : > { %1419 = vset.pattern.permute.xlu0 (!%p1192_p1), %v1703_v0  ;;  %1245 = vmatprep.subr.bf16.mxu1 (!%p1192_p1), %v1198_v25 }
 0x3a1   : > { %v725_v6 = vadd.s32 (!%p1192_p1), 8, %v724_v55  ;;  %vm728_vm6 = vcmp.le.s32.totalorder (!%p1192_p1), %v727_v56, %v724_v55  ;;  %1246 = vmatpush3.bf16.msra.mxu1 (!%p1192_p1), %v1198_v25  ;;  %v803_v55 = vld [vmem:[#allocation3] sm:$0xff] (!%p1192_p1) }
 0x3a3   : > { %vm729_vm8 = vcmp.le.s32.totalorder (!%p1192_p1), %v727_v56, %v725_v6 }
 0x3a6   : > { %1242 = vmatmul.mubr.msk.bf16.vlgmr.msra.gmra.mrb[0].mxu0 %vm664_vm5, %v1194_v53 }
 0x479   : > { %v1243_v7 = vpop.f32.mrb[0].mxu0 }
 0x47a   : > { %v736_v2 = vsel %vm728_vm6, %v1243_v7, -1e+30  ;;  %v708_v3 = vpop.f32.mrb[1].mxu0 }
 0x47b   : > { %v734_v57 = vsel %vm728_vm6, %v708_v3, -1e+30  ;;  %v1244_v58 = vpop.f32.mrb[2].mxu0  ;;  %v749_v59 = vsel %vm742_vm7, %v736_v2, -inf  ;;  %v805_v3 = vld [vmem:[#allocation3 + $0x10] sm:$0xff] }
 0x47c   : > { %v737_v60 = vsel %vm729_vm8, %v1244_v58, -1e+30  ;;  %750 = vmax.xlane.f32.xlu1 %v749_v59  ;;  %v711_v61 = vpop.f32.mrb[3].mxu0  ;;  %v743_v4 = vsel %vm742_vm7, %v734_v57, -inf }
 0x47d   : > { %v735_v5 = vsel %vm729_vm8, %v711_v61, -1e+30  ;;  %744 = vmax.xlane.f32.xlu0 %v743_v4  ;;  %v752_v62 = vsel %vm742_vm7, %v737_v60, -inf  ;;  %v806_v61 = vld [vmem:[#allocation3 + $0x18] sm:$0xff] }
 0x47e   : > { %v746_v63 = vsel %vm742_vm7, %v735_v5, -inf }
 0x480   : > { %753 = vmax.xlane.f32.xlu1 %v752_v62 }
 0x481   : > { %747 = vmax.xlane.f32.xlu0 %v746_v63 }
 0x509   : > { %v751_v11 = vpop.xlane.xlu1 %750 }
 0x50a   : > { %v757_v12 = vmax.f32 %v740_v1, %v751_v11  ;;  %v745_v13 = vpop.xlane.xlu0 %744 }
 0x50b   : > { %v755_v14 = vmax.f32 %v738_v10, %v745_v13 }
 0x50c   : > { %v761_v16 = vsub.f32 %v740_v1, %v757_v12  ;;  %935 = vst.msk [vmem:[#allocation2 + $0x10] sm:$0xff] %vm831_vm9, %v757_v12  ;;  %783 = vperm.xlu1 %1420, %v757_v12  }
 0x50d   : > { %v759_v18 = vsub.f32 %v738_v10, %v755_v14  ;;  %933 = vst.msk [vmem:[#allocation2] sm:$0xff] %vm831_vm9, %v755_v14  ;;  %v754_v19 = vpop.xlane.xlu1 %753  ;;  %773 = vperm.xlu0 %1419, %v755_v14  }
 0x50e   : > { %v758_v20 = vmax.f32 %v741_v15, %v754_v19  ;;  %v748_v21 = vpop.xlane.xlu0 %747  ;;  %v767_v48 = vmul.f32 1.442695, %v761_v16  ;;  %v836_v19 = vld [vmem:[#allocation4] sm:$0xff] }
 0x50f   : > { %v756_v22 = vmax.f32 %v739_v17, %v748_v21  ;;  %v763_v47 = vmul.f32 1.442695, %v759_v18  ;;  %v838_v18 = vld [vmem:[#allocation4 + $0x10] sm:$0xff] }
 0x510   : > { %v762_v23 = vsub.f32 %v741_v15, %v758_v20  ;;  %936 = vst.msk [vmem:[#allocation2 + $0x18] sm:$0xff] %vm831_vm9, %v758_v20 }
 0x511   : > { %v760_v24 = vsub.f32 %v739_v17, %v756_v22  ;;  %934 = vst.msk [vmem:[#allocation2 + $0x8] sm:$0xff] %vm831_vm9, %v756_v22  ;;  %778 = vperm.xlu1 %1420, %v756_v22   ;;  %v837_v22 = vld [vmem:[#allocation4 + $0x8] sm:$0xff] }
 0x512   : > { %v769_v49 = vmul.f32 1.442695, %v762_v23 }
 0x513   : > { %v765_v46 = vmul.f32 1.442695, %v760_v24 }
 0x515   : > { %788 = vperm.xlu1 %1420, %v758_v20   ;;  %v839_v20 = vld [vmem:[#allocation4 + $0x18] sm:$0xff] }
 0x58b   : > { %v784_v26 = vpop.permute.xlu1 %783 }
 0x58c   : > { %v774_v27 = vpop.permute.xlu0 %773  ;;  %v793_v33 = vsub.f32 %v736_v2, %v784_v26 }
 0x58d   : > { %v791_v29 = vsub.f32 %v734_v57, %v774_v27 }
 0x590   : > { %v779_v28 = vpop.permute.xlu1 %778 }
 0x591   : > { %v792_v30 = vsub.f32 %v735_v5, %v779_v28 }
 0x593   : > { %v795_v31 = vpack.c.bf16 %v792_v30, %v791_v29 }
 0x594   : > { %v789_v32 = vpop.permute.xlu1 %788 }
 0x595   : > { %v798_v34 = vmul.bf16 1069105081, %v795_v31  ;;  %v794_v35 = vsub.f32 %v737_v60, %v789_v32 }
 0x597   : > { %1421 = vpow.bf16 %v798_v34  ;;  %v796_v36 = vpack.c.bf16 %v794_v35, %v793_v33 }
 0x599   : > { %v801_v37 = vmul.bf16 1069105081, %v796_v36 }
 0x59b   : > { %1423 = vpow.bf16 %v801_v37 }
 0x59c   : > { %1425 = vpow2.f32 %v765_v46 }
 0x59d   : > { %1427 = vpow2.f32 %v763_v47 }
 0x59e   : > { %1429 = vpow2.f32 %v767_v48 }
 0x59f   : > { %1431 = vpow2.f32 %v769_v49 }
 0x5a2   : > { %v1422_v38 = vpop.eup %1421 }
 0x5a3   : > { %1247 = vmatprep.mubr.msk.bf16.mxu1 %vm742_vm7, %v1422_v38  ;;  %v812_v8 = vunpack.c.h.bf16 %v1422_v38  ;;  %v811_v9 = vunpack.c.l.bf16 %v1422_v38 }
 0x5a5   : > { %v818_v39 = vsel %vm742_vm7, %v812_v8, 0.0  ;;  %v815_v41 = vsel %vm742_vm7, %v811_v9, 0.0 }
 0x5a6   : > { %v1424_v42 = vpop.eup %1423  ;;  %819 = vadd.xlane.f32.xlu0 %v818_v39  ;;  %816 = vadd.xlane.f32.xlu1 %v815_v41 }
 0x5a7   : > { %1248 = vmatmul.mubr.msk.bf16.vlgmr.msra.gmra.mrb[0].mxu1 %vm742_vm7, %v1424_v42  ;;  %v813_v43 = vunpack.c.l.bf16 %v1424_v42  ;;  %v814_v45 = vunpack.c.h.bf16 %v1424_v42  ;;  %v1426_v50 = vpop.eup %1425 }
 0x5a8   : > { %v1428_v51 = vpop.eup %1427  ;;  %v808_v56 = vmul.f32 %v1426_v50, %v804_v54 }
 0x5a9   : > { %v821_v44 = vsel %vm742_vm7, %v813_v43, 0.0  ;;  %v824_v40 = vsel %vm742_vm7, %v814_v45, 0.0  ;;  %v1430_v52 = vpop.eup %1429  ;;  %v807_v6 = vmul.f32 %v1428_v51, %v803_v55 }
 0x5aa   : > { %822 = vadd.xlane.f32.xlu1 %v821_v44  ;;  %v1432_v53 = vpop.eup %1431  ;;  %v809_v59 = vmul.f32 %v1430_v52, %v805_v3 }
 0x5ab   : > { %v810_v5 = vmul.f32 %v1432_v53, %v806_v61 }
 0x5ae   : > { %825 = vadd.xlane.f32.xlu1 %v824_v40 }
 0x5bc   : > { %847 = vperm.xlu0 %1419, %v1426_v50  }
 0x5bf   : > { %842 = vperm.xlu1 %1420, %v1428_v51  }
 0x5c3   : > { %852 = vperm.xlu1 %1420, %v1430_v52  }
 0x5c7   : > { %857 = vperm.xlu1 %1420, %v1432_v53  }
 0x633   : > { %v820_v7 = vpop.xlane.xlu0 %819  ;;  %v817_v2 = vpop.xlane.xlu1 %816 }
 0x634   : > { %v828_v57 = vadd.f32 %v820_v7, %v808_v56  ;;  %v827_v58 = vadd.f32 %v817_v2, %v807_v6 }
 0x636   : > { %833 = vst.msk [vmem:[#allocation3 + $0x8] sm:$0xff] %vm831_vm9, %v828_v57  ;;  %832 = vst.msk [vmem:[#allocation3] sm:$0xff] %vm831_vm9, %v827_v58 }
 0x637   : > { %v823_v60 = vpop.xlane.xlu1 %822 }
 0x638   : > { %v829_v4 = vadd.f32 %v823_v60, %v809_v59 }
 0x63a   : > { %834 = vst.msk [vmem:[#allocation3 + $0x10] sm:$0xff] %vm831_vm9, %v829_v4 }
 0x63b   : > { %v826_v62 = vpop.xlane.xlu1 %825  ;;  %v848_v23 = vpop.permute.xlu0 %847 }
 0x63c   : > { %v830_v63 = vadd.f32 %v826_v62, %v810_v5  ;;  %v861_v30 = vmul.f32 %v848_v23, %v837_v22 }
 0x63d   : > { %v938_v0 = vld [vmem:[#allocation3 + $0x8] sm:$0xff]  ;;  %v937_v1 = vld [vmem:[#allocation3] sm:$0xff] }
 0x63e   : > { %835 = vst.msk [vmem:[#allocation3 + $0x18] sm:$0xff] %vm831_vm9, %v830_v63  ;;  %1433 = vrcp.f32 %v938_v0 }
 0x63f   : > { %1435 = vrcp.f32 %v937_v1  ;;  %v843_v16 = vpop.permute.xlu1 %842 }
 0x640   : > { %v860_v25 = vmul.f32 %v843_v16, %v836_v19 }
 0x641   : > { %v939_v10 = vld [vmem:[#allocation3 + $0x10] sm:$0xff] }
 0x642   : > { %1437 = vrcp.f32 %v939_v10 }
 0x643   : > { %v853_v17 = vpop.permute.xlu1 %852 }
 0x644   : > { %v862_v24 = vmul.f32 %v853_v17, %v838_v18 }
 0x645   : > { %v940_v11 = vld [vmem:[#allocation3 + $0x18] sm:$0xff] }
 0x646   : > { %1439 = vrcp.f32 %v940_v11 }
 0x647   : > { %v858_v21 = vpop.permute.xlu1 %857 }
 0x648   : > { %v1434_v12 = vpop.eup %1433  ;;  %v863_v27 = vmul.f32 %v858_v21, %v839_v20 }
 0x649   : > { %v1436_v13 = vpop.eup %1435  ;;  %956 = vperm.xlu0 %1419, %v1434_v12  }
 0x64a   : > { %951 = vperm.xlu1 %1420, %v1436_v13  }
 0x64c   : > { %v1438_v14 = vpop.eup %1437 }
 0x64e   : > { %961 = vperm.xlu1 %1420, %v1438_v14  }
 0x650   : > { %v1440_v15 = vpop.eup %1439 }
 0x651   : > { %966 = vperm.xlu0 %1419, %v1440_v15  }
 0x67a   : > { %v1249_v26 = vpop.f32.mrb[0].mxu1 }
 0x67b   : > { %v927_v28 = vadd.f32 %v1249_v26, %v862_v24  ;;  %v910_v29 = vpop.f32.mrb[1].mxu1 }
 0x67c   : > { %v925_v31 = vadd.f32 %v910_v29, %v860_v25  ;;  %v1250_v32 = vpop.f32.mrb[2].mxu1 }
 0x67d   : > { %931 = vst.msk [vmem:[#allocation4 + $0x10] sm:$0xff] %vm664_vm5, %v927_v28  ;;  %v928_v33 = vadd.f32 %v1250_v32, %v863_v27  ;;  %v913_v34 = vpop.f32.mrb[3].mxu1 }
 0x67e   : > { %929 = vst.msk [vmem:[#allocation4] sm:$0xff] %vm664_vm5, %v925_v31  ;;  %v926_v35 = vadd.f32 %v913_v34, %v861_v30 }
 0x67f   : > { %932 = vst.msk [vmem:[#allocation4 + $0x18] sm:$0xff] %vm664_vm5, %v928_v33 }
 0x680   : > { %930 = vst.msk [vmem:[#allocation4 + $0x8] sm:$0xff] %vm664_vm5, %v926_v35 }
 0x684   : > { %v947_v43 = vld [vmem:[#allocation4 + $0x10] sm:$0xff] }
 0x685   : > { %v945_v8 = vld [vmem:[#allocation4] sm:$0xff] }
 0x686   : > { %v948_v47 = vld [vmem:[#allocation4 + $0x18] sm:$0xff] }
 0x687   : > { %v946_v36 = vld [vmem:[#allocation4 + $0x8] sm:$0xff] }
 0x6c8   : > { %v957_v37 = vpop.permute.xlu0 %956 }
 0x6c9   : > { %v970_v38 = vmul.f32 %v957_v37, %v946_v36  ;;  %v952_v9 = vpop.permute.xlu1 %951 }
 0x6ca   : > { %v969_v39 = vmul.f32 %v952_v9, %v945_v8 }
 0x6cb   : > { %v1212_v41 = vpack.c.bf16 %v970_v38, %v970_v38 }
 0x6cc   : > { %v1211_v42 = vpack.c.bf16 %v969_v39, %v969_v39 }
 0x6cd   : > { %991 = vst.msk [vmem:[%s2104_s22 + $0x4] sm:$0xf] %vm989_vm10, %v1212_v41  ;;  %v962_v44 = vpop.permute.xlu1 %961 }
 0x6ce   : > { %990 = vst.msk [vmem:[%s2104_s22] sm:$0xf] %vm989_vm10, %v1211_v42  ;;  %v971_v45 = vmul.f32 %v962_v44, %v947_v43 }
 0x6d0   : > { %v1213_v46 = vpack.c.bf16 %v971_v45, %v971_v45  ;;  %v967_v40 = vpop.permute.xlu0 %966 }
 0x6d1   : > { %v972_v48 = vmul.f32 %v967_v40, %v948_v47 }
 0x6d2   : > { %992 = vst.msk [vmem:[%s2104_s22 + $0x8] sm:$0xf] %vm989_vm10, %v1213_v46 }
 0x6d3   : > { %v1214_v49 = vpack.c.bf16 %v972_v48, %v972_v48 }
 0x6d5   : > { %993 = vst.msk [vmem:[%s2104_s22 + $0xc] sm:$0xf] %vm989_vm10, %v1214_v49 }
 0x6d6 PF: > { %s1002_s28 = sld [smem:[#allocation6]]  ;;  %s2379_s7 = sld [smem:[#allocation23_spill]] }
 0x6d7   : > { %s2381_s15 = sld [smem:[#allocation28_spill]]  ;;  %s1014_s29 = sshll.u32 %s2104_s22, 4  ;;  %s2221_s29 = int_to_ptr.vmem [resolvable:$true] %s1014_s29 }
 0x6d8   : > { %s2382_s5 = sld [smem:[#allocation31_spill]]  ;;  %s2230_s27 = scalar_lea.sflag [#allocation10], %s326_s11 }
 0x6d9   : > { %s1531_s10 = scalar_lea.vmem %s2221_s29, 256  ;;  %s1704_s18 = smov [#allocation14]  }
 0x6da   : > { %p1532_p6 = scmp.ne.s32.totalorder %s2221_s29, %s1531_s10  ;;  %s1535_s23 = sshll.u32 %s1704_s18, 4  ;;  %s1536_s23 = int_to_ptr.vmem [resolvable:$false] %s1535_s23 }
 0x6db   : > { %s1537_s19 = scalar_lea.vmem %s1536_s23, 512  ;;  %p1538_p2 = scmp.lt.s32.totalorder %s2221_s29, %s1536_s23 }
 0x6dc   : > { %s1207_s25 = sshll.u32 %s2379_s7, 2  ;;  %s1206_s20 = sshll.u32 %s1002_s28, 1 }
 0x6dd   : > { %s1011_s14 = sadd.s32 %s1207_s25, %s1206_s20  ;;  %p2383_p10 = scmp.ne.s32.totalorder %s2381_s15, 0 }
 0x6de   : > { %s1208_s13 = sshll.u32 %s1011_s14, 6  ;;  %p1539_p3 = scmp.lt.s32.totalorder %s1537_s19, %s1531_s10 }
 0x6df   : > { %s2226_s24 = scalar_lea.hbm %s2382_s5, %s1208_s13  ;;  %p1533_p7 = pnand %p1532_p6, %p2383_p10 }
 0x6e0   : > { %p1540_p8 = por %p1539_p3, %p1538_p2 }
 0x6e1   : > { %p1534_p11 = pneg %p1533_p7 }
 0x6e3   : > { %p1541_p12 = pnand %p1540_p8, %p1534_p11 }
 0x6e5   : > { %1544 = shalt.err (!%p1541_p12)
}
 0x6e6   : > { %s1545_s11 = scalar_lea.hbm %s2226_s24, 256  ;;  %s1549_s7 = scalar_lea.hbm %s2382_s5, 512 }
 0x6e7   : > { %p1546_p5 = scmp.ne.s32.totalorder %s2226_s24, %s1545_s11  ;;  %p1550_p9 = scmp.lt.u32.totalorder %s2226_s24, %s2382_s5 }
 0x6e8   : > { %p1551_p0 = scmp.lt.u32.totalorder %s1549_s7, %s1545_s11  ;;  %p1553_p6 = scmp.lt.u32.totalorder %s1545_s11, %s2226_s24 }
 0x6e9   : > { %p1547_p13 = pnand %p1546_p5, %p2383_p10 }
 0x6ea   : > { %p1552_p1 = por %p1551_p0, %p1550_p9 }
 0x6eb   : > { %p1548_p4 = pneg %p1547_p13 }
 0x6ec   : > { %p1554_p7 = por %p1553_p6, %p1552_p1 }
 0x6ee   : > { %p1555_p11 = pnand %p1554_p7, %p1548_p4 }
 0x6f0   : > { %1558 = shalt.err (!%p1555_p11)
}
 0x6f1   : > { %s1705_s20 = smov 64   ;;  %s1706_s14 = smov 4  }
 0x6f2   : > { %1259 = dma.vmem_to_hbm [thread:$0]  (%p2383_p10), %s2221_s29, 256, %s2226_s24, %s2230_s27, %s1705_s20, %s1705_s20, %s1706_s14  }
 0x6f3 PF: > { %s2384_s13 = sld [smem:[#allocation19_spill]]  ;;  %p2385_p2 = scmp.ne.s32.totalorder %s2354_s12, 0 }
 0x6f4   : > { %p2386_p3 = scmp.ge.s32.totalorder %s1693_s9, 2 }
 0x6f6   : > { %p1272_p8 = pnand %p2386_p3, %p2385_p2 }
 0x6f9   : > { %s1029_s16 = sand.u32 1, %s2384_s13  }
 0x6fa   : > { %s1030_s3 = scalar_lea.sflag [#allocation10], %s1029_s16 }
 0x6fb   : > { %1632 = dma.done.wait (!%p1272_p8), %s1030_s3, 256  }
 0x6fc   : > { %1634 = vsyncadd (!%p1272_p8), %s1030_s3, 4294967040  ;;  %s26_s9 = sadd.s32 1, %s1693_s9   ;;  %s2388_s22 = sld [smem:[#allocation20_spill]] }
 0x6fd   : > { %p2260_p12 = scmp.ge.s32.totalorder %s26_s9, 4   ;;  %s2389_s23 = sld [smem:[#allocation21_spill]] }
 0x6fe   : > { %s2390_s24 = sld [smem:[#allocation26_spill]]  ;;  %s2391_s15 = sld [smem:[#allocation22_spill]] }
 0x6ff   : > { %s2392_s28 = sld [smem:[#allocation27_spill]]  ;;  %s2393_s12 = sld [smem:[#allocation29_spill]] }
 0x700   : > { %s2394_s18 = sld [smem:[#allocation24_spill]]  ;;  %s2395_s25 = smov %s1653_s26 }
 0x701   : > { %s2396_s26 = smov %s1657_s0  ;;  %s2397_s0 = smov %s2014_s21 }
 0x702   : > { %s2398_s27 = smov %s1665_s1  ;;  %s2400_s29 = smov %s1677_s30 }
 0x703   : > { %s2401_s30 = smov %s1681_s6  ;;  %s2403_s7 = smov %s1689_s8 }
 0x704   : > { %s2399_s1 = smov %s2391_s15  ;;  %25 = sbr.rel (!%p2260_p12) target bundleno = 18 (0x12), region = 113 }
 0x705   : > { %s2402_s6 = smov %s2393_s12 }
 0x706   : > { %s2404_s8 = smov %s2394_s18 }
 0x70b   :  { %1035 = vsyncpa [#allocation9], 1 }
 0x70c   :  { %1037 = vsyncpa [#allocation9 + $0x1], 1 }
 0x70d   :  { %1038 = vsyncpa [#allocation12], 1 }
 0x70e   :  { %1040 = vsyncpa [#allocation12 + $0x1], 1 }
 0x70f   :  { %1041 = vsyncpa [#allocation10], 1 }
 0x710   :  { %1043 = vsyncpa [#allocation10 + $0x1], 1 }

</bundles_post_ra>
